<compile_context>
chip_gen: v7x
topology: tpu7x:2x2x1
jax: 0.10.0
libtpu: 0.0.40
codegen_flags: <defaults>
</compile_context>

<pallas_src>
import jax
import jax.numpy as jnp
from jax.experimental import pallas as pl
from jax.experimental.pallas import tpu as pltpu


def _prox_l1_kernel(clam_ref, x_ref, f_ref, o_ref):
    # clam_ref: SMEM f32 scalar; x_ref/f_ref/o_ref: (block_rows, lanes) VMEM tiles.
    c = clam_ref[0]
    x = x_ref[...].astype(jnp.float32)
    f = f_ref[...].astype(jnp.float32)
    o_ref[...] = (x + jnp.clip(f - x, -c, c)).astype(o_ref.dtype)


# Minimum second-to-last block dim per dtype packing (f32:8, bf16:16, int8/fp8:32).
_SUBLANE_MIN = {4: 8, 2: 16, 1: 32}

# Widest-first lane candidates (all multiples of 128 -> unmasked lane-dense stores).
_LANE_CANDIDATES = (32768, 16384, 8192, 4096, 2048, 1024, 512, 256, 128)


def _choose_lanes(n):
    """Widest lane extent (multiple of 128) that divides n exactly; n % 128 == 0."""
    for w in _LANE_CANDIDATES:
        if n % w == 0:
            return w
    raise ValueError("internal error: n must be a multiple of 128")


def _device_config():
    """Generation-aware (tile_bytes_per_input, multi_tensorcore) with safe defaults."""
    kind = ""
    try:
        kind = jax.devices()[0].device_kind.lower()
    except Exception:
        pass
    if "v7" in kind:
        # v7x: ~3.2 TB/s HBM, 64 MiB physical VMEM, 2 TensorCores per chip.
        # 4 MiB tiles -> 3 arrays x 2 buffers = 24 MiB, comfortable headroom.
        return 4 << 20, True
    if "v6" in kind:
        # v6e: 4 MiB tiles sit at ~86% of the HBM roofline, ~4x fewer grid steps.
        return 4 << 20, False
    # v5e (16 MiB default scoped VMEM) and unknown chips: keep 2 MiB per input.
    return 2 << 20, False


def _run_pallas(x2, f2, clam, *, block_rows, lanes, rows, dtype,
                semantics, vmem_limit, n_elems):
    itemsize = jnp.dtype(dtype).itemsize
    tile_spec = pl.BlockSpec((block_rows, lanes), lambda i: (i, 0))
    return pl.pallas_call(
        _prox_l1_kernel,
        out_shape=jax.ShapeDtypeStruct((rows, lanes), dtype),
        grid=(pl.cdiv(rows, block_rows),),
        in_specs=[
            pl.BlockSpec(memory_space=pltpu.SMEM),   # clambda scalar
            tile_spec,                               # x tile
            tile_spec,                               # f tile
        ],
        out_specs=tile_spec,
        compiler_params=pltpu.CompilerParams(
            dimension_semantics=semantics,
            vmem_limit_bytes=vmem_limit),
        cost_estimate=pl.CostEstimate(
            flops=3 * n_elems,
            transcendentals=0,
            bytes_accessed=3 * n_elems * itemsize),
    )(clam, x2, f2)


def _prox_aligned(x_flat, f_flat, clam, dtype, tile_bytes, multi_tc, vmem_limit):
    """Run the kernel on a flat, 128-aligned element count. Returns (rows, lanes)."""
    n = x_flat.shape[0]
    itemsize = jnp.dtype(dtype).itemsize
    lanes = _choose_lanes(n)
    rows = n // lanes

    sl = _SUBLANE_MIN.get(itemsize, 8)
    br = max(1, tile_bytes // (lanes * itemsize))
    if br >= rows:
        block_rows = rows                         # full extent: always legal
    else:
        block_rows = max(sl, (br // sl) * sl)     # keep divisible by sublane minimum
        if block_rows >= rows:
            block_rows = rows

    x2 = x_flat.reshape(rows, lanes)
    f2 = f_flat.reshape(rows, lanes)
    grid_len = pl.cdiv(rows, block_rows)

    common = dict(block_rows=block_rows, lanes=lanes, rows=rows, dtype=dtype,
                  vmem_limit=vmem_limit, n_elems=n)

    if multi_tc and grid_len >= 2:
        # v7x: explicitly split the (bandwidth-bound) grid across both
        # TensorCores. Fall back to the plain megacore semantic if this
        # generation/runtime rejects CORE_PARALLEL for this grid.
        try:
            out2 = _run_pallas(x2, f2, clam,
                               semantics=(pltpu.CORE_PARALLEL,), **common)
            jax.block_until_ready(out2)
            return out2
        except Exception:
            pass  # TODO(synk): verify in an xprof trace that both TCs stream DMAs.

    return _run_pallas(x2, f2, clam, semantics=("parallel",), **common)


def proximal_l1(x, f, clambda, *, target_tile_bytes=None,
                jnp_fallback_bytes=256 << 10):
    """res = x + clamp(f - x, -clambda, clambda), elementwise (e.g. NCHW)."""
    assert x.shape == f.shape and x.dtype == f.dtype
    orig_shape = x.shape
    dtype = x.dtype
    itemsize = jnp.dtype(dtype).itemsize
    n = x.size

    c32 = jnp.asarray(clambda, dtype=jnp.float32)

    def _jnp_path(xv, fv):
        xf = xv.astype(jnp.float32)
        ff = fv.astype(jnp.float32)
        return (xf + jnp.clip(ff - xf, -c32, c32)).astype(dtype)

    # Tiny inputs: kernel-launch + grid setup dominates -> fused XLA elementwise.
    if n < 128 or n * itemsize < jnp_fallback_bytes:
        return _jnp_path(x, f)

    tile_bytes, multi_tc = _device_config()
    if target_tile_bytes is not None:
        tile_bytes = int(target_tile_bytes)
    # 3 arrays x 2 pipeline buffers = 6 tiles, plus headroom; cap well below
    # v7x's 64 MiB physical VMEM.
    vmem_limit = int(min(48 << 20, 6 * tile_bytes + (8 << 20)))

    clam = jnp.asarray([clambda], dtype=jnp.float32)
    x_flat = x.reshape(-1)
    f_flat = f.reshape(-1)

    prefix_n = (n // 128) * 128
    tail_n = n - prefix_n

    if tail_n == 0:
        out2 = _prox_aligned(x_flat, f_flat, clam, dtype,
                             tile_bytes, multi_tc, vmem_limit)
        return out2.reshape(orig_shape)

    # Ragged size: kernel on the 128-aligned prefix (zero-copy layout), tail
    # (< 128 elements) in plain jnp; stitch back. Avoids the extra full-array
    # HBM passes that jnp.pad + output-slice would cost.
    out_pre = _prox_aligned(x_flat[:prefix_n], f_flat[:prefix_n], clam, dtype,
                            tile_bytes, multi_tc, vmem_limit).reshape(-1)
    out_tail = _jnp_path(x_flat[prefix_n:], f_flat[prefix_n:])
    return jnp.concatenate([out_pre, out_tail]).reshape(orig_shape)


if __name__ == "__main__":
    key = jax.random.PRNGKey(0)
    k1, k2, k3, k4 = jax.random.split(key, 4)
    clambda = 0.3

    # NCHW, matching typical PyTorch conv-feature inputs (aligned path).
    # jnp_fallback_bytes=0 forces the Pallas kernel even at this small demo size.
    x = jax.random.normal(k1, (2, 4, 16, 16), dtype=jnp.float32)
    f = jax.random.normal(k2, (2, 4, 16, 16), dtype=jnp.float32)
    out = proximal_l1(x, f, clambda, jnp_fallback_bytes=0)
    jax.block_until_ready(out)
    ref = x + jnp.clip(f - x, -clambda, clambda)
    assert out.shape == x.shape and out.dtype == x.dtype
    assert jnp.allclose(out, ref, atol=1e-6), "mismatch vs reference (aligned)"

    # Ragged-size sanity check (exercises the aligned-prefix + jnp-tail path).
    xr = jax.random.normal(k3, (2, 3, 5, 7), dtype=jnp.float32)
    fr = jax.random.normal(k4, (2, 3, 5, 7), dtype=jnp.float32)
    outr = proximal_l1(xr, fr, clambda, jnp_fallback_bytes=0)
    jax.block_until_ready(outr)
    refr = xr + jnp.clip(fr - xr, -clambda, clambda)
    assert outr.shape == xr.shape and outr.dtype == xr.dtype
    assert jnp.allclose(outr, refr, atol=1e-6), "mismatch vs reference (ragged)"

    print("KERNEL_OK")
</pallas_src>

<mosaic_0001>
module attributes {stable_mosaic.version = 11 : i64} {
  func.func @_prox_l1_kernel(%arg0: i32, %arg1: memref<1xf32, #tpu.memory_space<smem>>, %arg2: memref<1x2048xf32, #tpu.memory_space<vmem>>, %arg3: memref<1x2048xf32, #tpu.memory_space<vmem>>, %arg4: memref<1x2048xf32, #tpu.memory_space<vmem>>) attributes {dimension_semantics = [#tpu.dimension_semantics<parallel>], iteration_bounds = array<i64: 1>, scalar_prefetch = 0 : i64, scratch_operands = 0 : i64, tpu.core_type = #tpu.core_type<tc>, window_params = [{transform_indices = @transform_0, window_bounds = array<i64: 1>}, {transform_indices = @transform_1, window_bounds = array<i64: 1, 2048>}, {transform_indices = @transform_2, window_bounds = array<i64: 1, 2048>}, {transform_indices = @transform_3, window_bounds = array<i64: 1, 2048>}]} {
    %c0 = arith.constant 0 : index
    %0 = memref.load %arg1[%c0] : memref<1xf32, #tpu.memory_space<smem>>
    %c0_0 = arith.constant 0 : index
    %c0_1 = arith.constant 0 : index
    %1 = vector.load %arg2[%c0_0, %c0_1] : memref<1x2048xf32, #tpu.memory_space<vmem>>, vector<1x2048xf32>
    %c0_2 = arith.constant 0 : index
    %c0_3 = arith.constant 0 : index
    %2 = vector.load %arg3[%c0_2, %c0_3] : memref<1x2048xf32, #tpu.memory_space<vmem>>, vector<1x2048xf32>
    %3 = arith.subf %2, %1 : vector<1x2048xf32>
    %cst = arith.constant 0.000000e+00 : f32
    %4 = arith.subf %cst, %0 : f32
    %5 = vector.broadcast %4 : f32 to vector<1x2048xf32>
    %6 = arith.maximumf %5, %3 : vector<1x2048xf32>
    %7 = vector.broadcast %0 : f32 to vector<1x2048xf32>
    %8 = arith.minimumf %7, %6 : vector<1x2048xf32>
    %9 = arith.addf %1, %8 : vector<1x2048xf32>
    %c0_4 = arith.constant 0 : index
    %c0_5 = arith.constant 0 : index
    %10 = vector.load %arg4[%c0_4, %c0_5] : memref<1x2048xf32, #tpu.memory_space<vmem>>, vector<1x2048xf32>
    tpu.vector_store %arg4[%c0_4, %c0_5], %9 {strides = array<i32>} : memref<1x2048xf32, #tpu.memory_space<vmem>>, vector<1x2048xf32>,
    return
  }
  func.func @transform_0(%arg0: i32) -> i32 {
    %c0_i32 = arith.constant 0 : i32
    %c0_i32_0 = arith.constant 0 : i32
    return %c0_i32 : i32
  }
  func.func @transform_1(%arg0: i32) -> (i32, i32) {
    %c0_i32 = arith.constant 0 : i32
    %c0_i32_0 = arith.constant 0 : i32
    return %arg0, %c0_i32 : i32, i32
  }
  func.func @transform_2(%arg0: i32) -> (i32, i32) {
    %c0_i32 = arith.constant 0 : i32
    %c0_i32_0 = arith.constant 0 : i32
    return %arg0, %c0_i32 : i32, i32
  }
  func.func @transform_3(%arg0: i32) -> (i32, i32) {
    %c0_i32 = arith.constant 0 : i32
    %c0_i32_0 = arith.constant 0 : i32
    return %arg0, %c0_i32 : i32, i32
  }
}

</mosaic_0001>

<bundles_post_ra>
// kernel: tpu_custom_call.1
= control target key start
LH: loop header
LB: loop body
LE: loop exit
PB: predicated region body
PF: predicated region fallthrough
CT: control target
= control target key end

     0   :  { %9 = vsyncpa [#allocation4], 0  ;;  %s214_s0 = inlined_call_operand.<no memory space> [shape: f32[1], index: 0, kind: input, shape index: {}]   ;;  %s215_s1 = inlined_call_operand.hbm [shape: f32[1,2048], index: 1, kind: input, shape index: {}]   ;;  %s216_s2 = inlined_call_operand.hbm [shape: f32[1,2048], index: 2, kind: input, shape index: {}]   ;;  %s217_s3 = inlined_call_operand.hbm [shape: f32[1,2048], index: 3, kind: output, shape index: {}]  }
   0x1   :  { %10 = vsyncpa [#allocation7], 0 }
   0x2   :  { %11 = vsyncpa [#allocation5], 0  ;;  %s149_s12 = smov [#allocation3]   ;;  %s150_s14 = smov [#allocation6]  }
   0x3   :  { %s20_s13 = sshll.u32 %s149_s12, 4  ;;  %s30_s15 = sshll.u32 %s150_s14, 4  ;;  %s21_s13 = int_to_ptr.vmem [resolvable:$true] %s20_s13  ;;  %s31_s15 = int_to_ptr.vmem [resolvable:$true] %s30_s15 }
   0x4   :  { %s77_s18 = scalar_lea.hbm %s215_s1, 256 }
   0x5   :  { %p78_p0 = scmp.ne.s32.totalorder %s215_s1, %s77_s18  ;;  %p81_p1 = scmp.lt.u32.totalorder %s77_s18, %s215_s1 }
   0x7   :  { %p83_p2 = pnand %p81_p1, %p78_p0 }
   0x9   :  { %86 = shalt.err (!%p83_p2)
}
   0xa   :  { %s87_s23 = scalar_lea.vmem %s21_s13, 256  ;;  %p92_p4 = scmp.lt.s32.totalorder %s21_s13, %s21_s13 }
   0xb   :  { %p88_p3 = scmp.ne.s32.totalorder %s21_s13, %s87_s23  ;;  %p93_p5 = scmp.lt.s32.totalorder %s87_s23, %s87_s23 }
   0xd   :  { %p94_p6 = por %p93_p5, %p92_p4 }
   0xf   :  { %p95_p7 = pnand %p94_p6, %p88_p3 }
  0x11   :  { %98 = shalt.err (!%p95_p7)
}
  0x12   :  { %23 = dma.hbm_to_vmem [thread:$0]  %s215_s1, 256, %s21_s13, [#allocation4]  }
  0x13   :  { %s99_s28 = scalar_lea.hbm %s216_s2, 256 }
  0x14   :  { %p100_p8 = scmp.ne.s32.totalorder %s216_s2, %s99_s28  ;;  %p103_p9 = scmp.lt.u32.totalorder %s99_s28, %s216_s2 }
  0x16   :  { %p105_p10 = pnand %p103_p9, %p100_p8 }
  0x18   :  { %108 = shalt.err (!%p105_p10)
}
  0x19   :  { %s109_s6 = scalar_lea.vmem %s31_s15, 256  ;;  %p114_p12 = scmp.lt.s32.totalorder %s31_s15, %s31_s15 }
  0x1a   :  { %p110_p11 = scmp.ne.s32.totalorder %s31_s15, %s109_s6  ;;  %p115_p13 = scmp.lt.s32.totalorder %s109_s6, %s109_s6 }
  0x1c   :  { %p116_p0 = por %p115_p13, %p114_p12 }
  0x1e   :  { %p117_p1 = pnand %p116_p0, %p110_p11 }
  0x20   :  { %120 = shalt.err (!%p117_p1)
}
  0x21   :  { %33 = dma.hbm_to_vmem [thread:$0]  %s216_s2, 256, %s31_s15, [#allocation7]  }
  0x22   :  { %143 = dma.done.wait [#allocation4], 256  }
  0x23   :  { %144 = vsyncadd [#allocation4], 4294967040 }
  0x24   :  { %145 = dma.done.wait [#allocation7], 256  }
  0x25   :  { %146 = vsyncadd [#allocation7], 4294967040  ;;  %s47_s10 = ssub.f32 0.0, %s214_s0  ;;  %v41_v0 = vld [vmem:[#allocation3] sm:$0xff]  ;;  %v43_v1 = vld [vmem:[#allocation6] sm:$0xff]  ;;  %v51_v6 = vstv %s214_s0  ;;  %s151_s2 = smov [#allocation8]  }
  0x26   :  { %v42_v3 = vld [vmem:[#allocation3 + $0x8] sm:$0xff]  ;;  %v45_v4 = vsub.f32 %v43_v1, %v41_v0  ;;  %v44_v5 = vld [vmem:[#allocation6 + $0x8] sm:$0xff]  ;;  %s64_s13 = sshll.u32 %s151_s2, 4  ;;  %s65_s13 = int_to_ptr.vmem [resolvable:$true] %s64_s13 }
  0x27   :  { %v48_v2 = vstv %s47_s10  ;;  %v46_v7 = vsub.f32 %v44_v5, %v42_v3  ;;  %s121_s14 = scalar_lea.vmem %s65_s13, 256  ;;  %p126_p3 = scmp.lt.s32.totalorder %s65_s13, %s65_s13 }
  0x28   :  { %v49_v8 = vmax.f32 %v48_v2, %v45_v4  ;;  %p122_p2 = scmp.ne.s32.totalorder %s65_s13, %s121_s14  ;;  %p127_p4 = scmp.lt.s32.totalorder %s121_s14, %s121_s14 }
  0x29   :  { %v50_v9 = vmax.f32 %v48_v2, %v46_v7 }
  0x2a   :  { %v52_v10 = vmin.f32 %v51_v6, %v49_v8  ;;  %p128_p5 = por %p127_p4, %p126_p3 }
  0x2b   :  { %v53_v11 = vmin.f32 %v51_v6, %v50_v9 }
  0x2c   :  { %v54_v12 = vadd.f32 %v52_v10, %v41_v0  ;;  %p129_p6 = pnand %p128_p5, %p122_p2 }
  0x2d   :  { %v55_v13 = vadd.f32 %v53_v11, %v42_v3 }
  0x2e   :  { %56 = vst [vmem:[#allocation8] sm:$0xff] %v54_v12 }
  0x2f   :  { %57 = vst [vmem:[#allocation8 + $0x8] sm:$0xff] %v55_v13 }
  0x30   :  { %132 = shalt.err (!%p129_p6)
}
  0x31   :  { %s133_s16 = scalar_lea.hbm %s217_s3, 256 }
  0x32   :  { %p134_p7 = scmp.ne.s32.totalorder %s217_s3, %s133_s16  ;;  %p137_p8 = scmp.lt.u32.totalorder %s133_s16, %s217_s3 }
  0x34   :  { %p139_p9 = pnand %p137_p8, %p134_p7 }
  0x36   :  { %142 = shalt.err (!%p139_p9)
}
  0x37   :  { %67 = dma.vmem_to_hbm [thread:$0]  %s65_s13, 256, %s217_s3, [#allocation5]  }
  0x38   :  { %147 = dma.done.wait [#allocation5], 256  }
  0x39   :  { %148 = vsyncadd [#allocation5], 4294967040 }
  0x3a   :  { %71 = vsyncpa [#allocation4], 1 }
  0x3b   :  { %72 = vsyncpa [#allocation7], 1 }
  0x3c   :  { %73 = vsyncpa [#allocation5], 1 }

</bundles_post_ra>
